<compile_context>
chip_gen: v6e
topology: v6e:2x2x1
jax: 0.10.0
libtpu: 0.0.40
codegen_flags: <defaults>
</compile_context>

<pallas_src>
import jax
import jax.numpy as jnp
from jax.experimental import pallas as pl
from jax.experimental.pallas import tpu as pltpu

EPS = 1e-5                       # nn.BatchNorm1d default eps
_LANE = 128
_VMEM_LIMIT = 32 * 1024 * 1024   # raises v5e's 16 MiB scoped default; <= v7x scoped 32 MiB


def _round_up(x, m):
    return ((x + m - 1) // m) * m


def _choose_tiles(N, C_in, C_out, L_pad, *, target_block_bytes=2 << 20, max_bn=8):
    """Pick (TL, BN): lane tile (multiple of 128 dividing L_pad) and batch sub-block
    (divisor of N, capped for unrolling) so the per-step x+out block footprint
    approaches target_block_bytes instead of KB-scale blocks."""
    bytes_per_lane_per_row = (C_in + C_out) * 4
    lane_budget = max(_LANE, target_block_bytes // bytes_per_lane_per_row)

    if L_pad < _LANE:                       # defensive; L_pad is always >= 128 here
        tl = L_pad
    else:
        tl = _LANE
        t = (min(L_pad, lane_budget) // _LANE) * _LANE
        while t >= _LANE:                   # 128 always divides L_pad, so this terminates
            if L_pad % t == 0:
                tl = t
                break
            t -= _LANE

    bn_cap = min(max_bn, max(1, lane_budget // tl))
    bn = 1
    for d in range(1, N + 1):
        if N % d == 0 and d <= bn_cap:
            bn = d
    return tl, bn


def _stats_kernel(x_ref, w_ref, sum_ref, sq_ref):
    # x_ref: (BN, C_in, TL)   w_ref: (C_out, C_in)
    # sum_ref / sq_ref: (C_out, 1) per-grid-step partial statistics (reduced outside).
    c_out = w_ref.shape[0]
    w = w_ref[...]

    def body(b, carry):
        s_acc, q_acc = carry
        y = jnp.dot(w, x_ref[b], preferred_element_type=jnp.float32)   # MXU: k=1 conv
        y = jnp.maximum(y, 0.0)                                        # ReLU
        s_acc = s_acc + jnp.sum(y, axis=-1, keepdims=True)
        q_acc = q_acc + jnp.sum(y * y, axis=-1, keepdims=True)
        return s_acc, q_acc

    init = (jnp.zeros((c_out, 1), jnp.float32), jnp.zeros((c_out, 1), jnp.float32))
    s_tot, q_tot = jax.lax.fori_loop(0, x_ref.shape[0], body, init, unroll=True)
    sum_ref[...] = s_tot
    sq_ref[...] = q_tot


def _apply_kernel(x_ref, w_ref, scale_ref, shift_ref, o_ref):
    # x_ref: (BN, C_in, TL)   o_ref: (BN, C_out, TL)   scale/shift: (C_out, 1)
    w = w_ref[...]
    scale = scale_ref[...]
    shift = shift_ref[...]

    def body(b, carry):
        y = jnp.dot(w, x_ref[b], preferred_element_type=jnp.float32)
        y = jnp.maximum(y, 0.0)
        o_ref[b] = (y * scale + shift).astype(o_ref.dtype)             # lane-dense store
        return carry

    jax.lax.fori_loop(0, x_ref.shape[0], body, 0, unroll=True)
    # TODO(synk): for large channel counts (C_in ~ C_out >~ 256) write un-normalized y in
    # pass 1 and alias it here via input_output_aliases instead of recomputing the matmul.


@jax.jit
def conv1d_relu_bn(x, weight, gamma, beta):
    """x: (N, C_in, L); weight: (C_out, C_in, 1); gamma/beta: (C_out,). -> (N, C_out, L)."""
    N, C_in, L = x.shape
    C_out = weight.shape[0]

    x = x.astype(jnp.float32)
    w2d = weight.reshape(C_out, C_in).astype(jnp.float32)
    # TODO(synk): optionally accept / cast x+W to bf16 (keep f32 accumulation & BN math)
    # to halve the x DMA volume on bandwidth-bound shapes.

    # Pad L to a multiple of 128: zero columns give relu(W@0)=0, contributing nothing to
    # the statistics (true count N*L is used below), and keep every store unmasked.
    L_pad = L if L % _LANE == 0 else _round_up(L, _LANE)
    x_p = x if L_pad == L else jnp.pad(x, ((0, 0), (0, 0), (0, L_pad - L)))

    TL, BN = _choose_tiles(N, C_in, C_out, L_pad)
    grid = (N // BN, L_pad // TL)

    x_spec = pl.BlockSpec((BN, C_in, TL), lambda n, l: (n, 0, l))
    w_spec = pl.BlockSpec((C_out, C_in), lambda n, l: (0, 0))       # resident, fetched once
    vec_spec = pl.BlockSpec((C_out, 1), lambda n, l: (0, 0))
    part_spec = pl.BlockSpec((None, None, C_out, 1), lambda n, l: (n, l, 0, 0))

    flops_mm = 2 * N * C_out * C_in * L_pad
    cparams = pltpu.CompilerParams(
        dimension_semantics=("parallel", "parallel"),   # safe: every block written once
        vmem_limit_bytes=_VMEM_LIMIT)

    # ---- Pass 1: per-tile partial sum / sum-of-squares of relu(W @ x). ----
    part_sum, part_sq = pl.pallas_call(
        _stats_kernel,
        out_shape=(jax.ShapeDtypeStruct((grid[0], grid[1], C_out, 1), jnp.float32),
                   jax.ShapeDtypeStruct((grid[0], grid[1], C_out, 1), jnp.float32)),
        grid_spec=pltpu.PrefetchScalarGridSpec(
            num_scalar_prefetch=0, grid=grid,
            in_specs=[x_spec, w_spec],
            out_specs=[part_spec, part_spec]),
        compiler_params=cparams,
        cost_estimate=pl.CostEstimate(
            flops=flops_mm + 3 * N * C_out * L_pad,
            transcendentals=0,
            bytes_accessed=4 * (N * C_in * L_pad + C_out * C_in
                                + 2 * grid[0] * grid[1] * C_out)),
    )(x_p, w2d)

    # ---- Tiny O(C_out) glue: fold training-mode BN (biased variance) into scale/shift. ----
    count = float(N * L)
    mean = part_sum.sum(axis=(0, 1)) / count                     # (C_out, 1)
    var = part_sq.sum(axis=(0, 1)) / count - mean * mean
    scale = gamma.reshape(C_out, 1).astype(jnp.float32) * jax.lax.rsqrt(var + EPS)
    shift = beta.reshape(C_out, 1).astype(jnp.float32) - mean * scale
    # TODO(synk): BatchNorm1d running_mean / running_var updates (training-time side state)
    # are not materialized; the forward output is unaffected.

    # ---- Pass 2: recompute relu(W @ x), apply folded affine, lane-dense writes. ----
    out_p = pl.pallas_call(
        _apply_kernel,
        out_shape=jax.ShapeDtypeStruct((N, C_out, L_pad), x.dtype),
        grid_spec=pltpu.PrefetchScalarGridSpec(
            num_scalar_prefetch=0, grid=grid,
            in_specs=[x_spec, w_spec, vec_spec, vec_spec],
            out_specs=pl.BlockSpec((BN, C_out, TL), lambda n, l: (n, 0, l))),
        compiler_params=cparams,
        cost_estimate=pl.CostEstimate(
            flops=flops_mm + 3 * N * C_out * L_pad,
            transcendentals=0,
            bytes_accessed=4 * ((C_in + C_out) * N * L_pad + C_out * (C_in + 2))),
    )(x_p, w2d, scale, shift)

    return out_p if L_pad == L else out_p[:, :, :L]


def _ref_forward(x, weight, gamma, beta):
    """Pure-JAX reference of the PyTorch forward (training-mode BN, biased variance)."""
    y = jnp.einsum("oc,ncl->nol", weight[:, :, 0], x)
    y = jnp.maximum(y, 0.0)
    mean = y.mean(axis=(0, 2), keepdims=True)
    var = ((y - mean) ** 2).mean(axis=(0, 2), keepdims=True)
    return ((y - mean) * jax.lax.rsqrt(var + EPS) * gamma[None, :, None]
            + beta[None, :, None])


if __name__ == "__main__":
    # Module config: Conv1dReluBn(in_channels=4, out_channels=8) with defaults
    # kernel_size=1, stride=1, padding=0, dilation=1, bias=False.
    N, C_in, C_out, L = 2, 4, 8, 16

    key = jax.random.PRNGKey(0)
    kx, kw, kg, kb, kx2, kw2 = jax.random.split(key, 6)

    x = jax.random.normal(kx, (N, C_in, L), dtype=jnp.float32)
    bound = 1.0 / (C_in * 1) ** 0.5
    weight = jax.random.uniform(kw, (C_out, C_in, 1), jnp.float32, -bound, bound)
    gamma = jax.random.uniform(kg, (C_out,), jnp.float32, 0.5, 1.5)
    beta = 0.1 * jax.random.normal(kb, (C_out,), dtype=jnp.float32)

    out = conv1d_relu_bn(x, weight, gamma, beta)
    jax.block_until_ready(out)
    ref = _ref_forward(x, weight, gamma, beta)
    assert out.shape == (N, C_out, L)
    assert jnp.allclose(out, ref, atol=1e-4, rtol=1e-4), float(jnp.abs(out - ref).max())

    # Second small config: exercises batch sub-blocking (BN=8 -> 2 grid steps) and the
    # ragged-L padding path (200 -> 256 lanes, pad sliced off).
    N2, L2 = 16, 200
    x2 = jax.random.normal(kx2, (N2, C_in, L2), dtype=jnp.float32)
    w2 = jax.random.uniform(kw2, (C_out, C_in, 1), jnp.float32, -bound, bound)
    out2 = conv1d_relu_bn(x2, w2, gamma, beta)
    jax.block_until_ready(out2)
    ref2 = _ref_forward(x2, w2, gamma, beta)
    assert out2.shape == (N2, C_out, L2)
    assert jnp.allclose(out2, ref2, atol=1e-4, rtol=1e-4), float(jnp.abs(out2 - ref2).max())

    print("KERNEL_OK")
</pallas_src>

<mosaic_0001>
module attributes {stable_mosaic.version = 11 : i64} {
  func.func @_stats_kernel(%arg0: i32, %arg1: i32, %arg2: memref<2x4x128xf32, #tpu.memory_space<vmem>>, %arg3: memref<8x4xf32, #tpu.memory_space<vmem>>, %arg4: memref<1x1x8x1xf32, #tpu.memory_space<vmem>>, %arg5: memref<1x1x8x1xf32, #tpu.memory_space<vmem>>) attributes {dimension_semantics = [#tpu.dimension_semantics<parallel>, #tpu.dimension_semantics<parallel>], iteration_bounds = array<i64: 1, 1>, scalar_prefetch = 0 : i64, scratch_operands = 0 : i64, tpu.core_type = #tpu.core_type<tc>, window_params = [{transform_indices = @transform_0, window_bounds = array<i64: 2, 4, 128>}, {pipeline_mode = #tpu.pipeline_mode<synchronous>, transform_indices = @transform_1, window_bounds = array<i64: 8, 4>}, {transform_indices = @transform_2, window_bounds = array<i64: 1, 1, 8, 1>}, {transform_indices = @transform_3, window_bounds = array<i64: 1, 1, 8, 1>}]} {
    %c0 = arith.constant 0 : index
    %c0_0 = arith.constant 0 : index
    %0 = vector.load %arg3[%c0, %c0_0] : memref<8x4xf32, #tpu.memory_space<vmem>>, vector<8x4xf32>
    %cst = arith.constant 0.000000e+00 : f32
    %1 = vector.broadcast %cst : f32 to vector<8x1xf32>
    %cst_1 = arith.constant 0.000000e+00 : f32
    %2 = vector.broadcast %cst_1 : f32 to vector<8x1xf32>
    %c0_i32 = arith.constant 0 : i32
    %3 = arith.index_cast %c0_i32 : i32 to index
    %c0_2 = arith.constant 0 : index
    %c0_3 = arith.constant 0 : index
    %4 = vector.load %arg2[%3, %c0_2, %c0_3] : memref<2x4x128xf32, #tpu.memory_space<vmem>>, vector<1x4x128xf32>
    %5 = vector.shape_cast %4 : vector<1x4x128xf32> to vector<4x128xf32>
    %cst_4 = arith.constant dense<0.000000e+00> : vector<8x128xf32>
    %6 = tpu.matmul %0, %5, %cst_4 {dimension_numbers = #tpu.dot_dimension_numbers<[1], [0], [0], [1], [0, 0, 1, 1], [], []>} : vector<8x4xf32>, vector<4x128xf32>, vector<8x128xf32> -> vector<8x128xf32>
    %cst_5 = arith.constant 0.000000e+00 : f32
    %7 = vector.broadcast %cst_5 : f32 to vector<8x128xf32>
    %8 = arith.maximumf %6, %7 : vector<8x128xf32>
    %cst_6 = arith.constant dense<0.000000e+00> : vector<8xf32>
    %9 = vector.multi_reduction <add>, %8, %cst_6 [1] : vector<8x128xf32> to vector<8xf32>
    %10 = vector.shape_cast %9 : vector<8xf32> to vector<8x1xf32>
    %11 = arith.addf %1, %10 : vector<8x1xf32>
    %12 = arith.mulf %8, %8 : vector<8x128xf32>
    %cst_7 = arith.constant dense<0.000000e+00> : vector<8xf32>
    %13 = vector.multi_reduction <add>, %12, %cst_7 [1] : vector<8x128xf32> to vector<8xf32>
    %14 = vector.shape_cast %13 : vector<8xf32> to vector<8x1xf32>
    %15 = arith.addf %2, %14 : vector<8x1xf32>
    %c1_i32 = arith.constant 1 : i32
    %16 = arith.index_cast %c1_i32 : i32 to index
    %c0_8 = arith.constant 0 : index
    %c0_9 = arith.constant 0 : index
    %17 = vector.load %arg2[%16, %c0_8, %c0_9] : memref<2x4x128xf32, #tpu.memory_space<vmem>>, vector<1x4x128xf32>
    %18 = vector.shape_cast %17 : vector<1x4x128xf32> to vector<4x128xf32>
    %cst_10 = arith.constant dense<0.000000e+00> : vector<8x128xf32>
    %19 = tpu.matmul %0, %18, %cst_10 {dimension_numbers = #tpu.dot_dimension_numbers<[1], [0], [0], [1], [0, 0, 1, 1], [], []>} : vector<8x4xf32>, vector<4x128xf32>, vector<8x128xf32> -> vector<8x128xf32>
    %cst_11 = arith.constant 0.000000e+00 : f32
    %20 = vector.broadcast %cst_11 : f32 to vector<8x128xf32>
    %21 = arith.maximumf %19, %20 : vector<8x128xf32>
    %cst_12 = arith.constant dense<0.000000e+00> : vector<8xf32>
    %22 = vector.multi_reduction <add>, %21, %cst_12 [1] : vector<8x128xf32> to vector<8xf32>
    %23 = vector.shape_cast %22 : vector<8xf32> to vector<8x1xf32>
    %24 = arith.addf %11, %23 : vector<8x1xf32>
    %25 = arith.mulf %21, %21 : vector<8x128xf32>
    %cst_13 = arith.constant dense<0.000000e+00> : vector<8xf32>
    %26 = vector.multi_reduction <add>, %25, %cst_13 [1] : vector<8x128xf32> to vector<8xf32>
    %27 = vector.shape_cast %26 : vector<8xf32> to vector<8x1xf32>
    %28 = arith.addf %15, %27 : vector<8x1xf32>
    %c2_i32 = arith.constant 2 : i32
    %c0_14 = arith.constant 0 : index
    %c0_15 = arith.constant 0 : index
    %c0_16 = arith.constant 0 : index
    %c0_17 = arith.constant 0 : index
    %29 = vector.load %arg4[%c0_14, %c0_15, %c0_16, %c0_17] : memref<1x1x8x1xf32, #tpu.memory_space<vmem>>, vector<1x1x8x1xf32>
    %30 = vector.shape_cast %29 : vector<1x1x8x1xf32> to vector<8x1xf32>
    %31 = vector.shape_cast %24 : vector<8x1xf32> to vector<1x1x8x1xf32>
    tpu.vector_store %arg4[%c0_14, %c0_15, %c0_16, %c0_17], %31 {strides = array<i32>} : memref<1x1x8x1xf32, #tpu.memory_space<vmem>>, vector<1x1x8x1xf32>,
    %c0_18 = arith.constant 0 : index
    %c0_19 = arith.constant 0 : index
    %c0_20 = arith.constant 0 : index
    %c0_21 = arith.constant 0 : index
    %32 = vector.load %arg5[%c0_18, %c0_19, %c0_20, %c0_21] : memref<1x1x8x1xf32, #tpu.memory_space<vmem>>, vector<1x1x8x1xf32>
    %33 = vector.shape_cast %32 : vector<1x1x8x1xf32> to vector<8x1xf32>
    %34 = vector.shape_cast %28 : vector<8x1xf32> to vector<1x1x8x1xf32>
    tpu.vector_store %arg5[%c0_18, %c0_19, %c0_20, %c0_21], %34 {strides = array<i32>} : memref<1x1x8x1xf32, #tpu.memory_space<vmem>>, vector<1x1x8x1xf32>,
    return
  }
  func.func @transform_0(%arg0: i32, %arg1: i32) -> (i32, i32, i32) {
    %c0_i32 = arith.constant 0 : i32
    %c0_i32_0 = arith.constant 0 : i32
    return %arg0, %c0_i32, %arg1 : i32, i32, i32
  }
  func.func @transform_1(%arg0: i32, %arg1: i32) -> (i32, i32) {
    %c0_i32 = arith.constant 0 : i32
    %c0_i32_0 = arith.constant 0 : i32
    %c0_i32_1 = arith.constant 0 : i32
    return %c0_i32, %c0_i32_0 : i32, i32
  }
  func.func @transform_2(%arg0: i32, %arg1: i32) -> (i32, i32, i32, i32) {
    %c0_i32 = arith.constant 0 : i32
    %c0_i32_0 = arith.constant 0 : i32
    %c0_i32_1 = arith.constant 0 : i32
    return %arg0, %arg1, %c0_i32, %c0_i32_0 : i32, i32, i32, i32
  }
  func.func @transform_3(%arg0: i32, %arg1: i32) -> (i32, i32, i32, i32) {
    %c0_i32 = arith.constant 0 : i32
    %c0_i32_0 = arith.constant 0 : i32
    %c0_i32_1 = arith.constant 0 : i32
    return %arg0, %arg1, %c0_i32, %c0_i32_0 : i32, i32, i32, i32
  }
}

module attributes {stable_mosaic.version = 11 : i64} {
  func.func @_apply_kernel(%arg0: i32, %arg1: i32, %arg2: memref<2x4x128xf32, #tpu.memory_space<vmem>>, %arg3: memref<8x4xf32, #tpu.memory_space<vmem>>, %arg4: memref<8x1xf32, #tpu.memory_space<vmem>>, %arg5: memref<8x1xf32, #tpu.memory_space<vmem>>, %arg6: memref<2x8x128xf32, #tpu.memory_space<vmem>>) attributes {dimension_semantics = [#tpu.dimension_semantics<parallel>, #tpu.dimension_semantics<parallel>], iteration_bounds = array<i64: 1, 1>, scalar_prefetch = 0 : i64, scratch_operands = 0 : i64, tpu.core_type = #tpu.core_type<tc>, window_params = [{transform_indices = @transform_0, window_bounds = array<i64: 2, 4, 128>}, {pipeline_mode = #tpu.pipeline_mode<synchronous>, transform_indices = @transform_1, window_bounds = array<i64: 8, 4>}, {pipeline_mode = #tpu.pipeline_mode<synchronous>, transform_indices = @transform_2, window_bounds = array<i64: 8, 1>}, {pipeline_mode = #tpu.pipeline_mode<synchronous>, transform_indices = @transform_3, window_bounds = array<i64: 8, 1>}, {transform_indices = @transform_4, window_bounds = array<i64: 2, 8, 128>}]} {
    %c0 = arith.constant 0 : index
    %c0_0 = arith.constant 0 : index
    %0 = vector.load %arg3[%c0, %c0_0] : memref<8x4xf32, #tpu.memory_space<vmem>>, vector<8x4xf32>
    %c0_1 = arith.constant 0 : index
    %c0_2 = arith.constant 0 : index
    %1 = vector.load %arg4[%c0_1, %c0_2] : memref<8x1xf32, #tpu.memory_space<vmem>>, vector<8x1xf32>
    %c0_3 = arith.constant 0 : index
    %c0_4 = arith.constant 0 : index
    %2 = vector.load %arg5[%c0_3, %c0_4] : memref<8x1xf32, #tpu.memory_space<vmem>>, vector<8x1xf32>
    %c0_i32 = arith.constant 0 : i32
    %3 = arith.index_cast %c0_i32 : i32 to index
    %c0_5 = arith.constant 0 : index
    %c0_6 = arith.constant 0 : index
    %4 = vector.load %arg2[%3, %c0_5, %c0_6] : memref<2x4x128xf32, #tpu.memory_space<vmem>>, vector<1x4x128xf32>
    %5 = vector.shape_cast %4 : vector<1x4x128xf32> to vector<4x128xf32>
    %cst = arith.constant dense<0.000000e+00> : vector<8x128xf32>
    %6 = tpu.matmul %0, %5, %cst {dimension_numbers = #tpu.dot_dimension_numbers<[1], [0], [0], [1], [0, 0, 1, 1], [], []>} : vector<8x4xf32>, vector<4x128xf32>, vector<8x128xf32> -> vector<8x128xf32>
    %cst_7 = arith.constant 0.000000e+00 : f32
    %7 = vector.broadcast %cst_7 : f32 to vector<8x128xf32>
    %8 = arith.maximumf %6, %7 : vector<8x128xf32>
    %9 = vector.broadcast %1 : vector<8x1xf32> to vector<8x128xf32>
    %10 = arith.mulf %8, %9 : vector<8x128xf32>
    %11 = vector.broadcast %2 : vector<8x1xf32> to vector<8x128xf32>
    %12 = arith.addf %10, %11 : vector<8x128xf32>
    %13 = arith.index_cast %c0_i32 : i32 to index
    %c0_8 = arith.constant 0 : index
    %c0_9 = arith.constant 0 : index
    %14 = vector.load %arg6[%13, %c0_8, %c0_9] : memref<2x8x128xf32, #tpu.memory_space<vmem>>, vector<1x8x128xf32>
    %15 = vector.shape_cast %14 : vector<1x8x128xf32> to vector<8x128xf32>
    %16 = vector.shape_cast %12 : vector<8x128xf32> to vector<1x8x128xf32>
    tpu.vector_store %arg6[%13, %c0_8, %c0_9], %16 {strides = array<i32>} : memref<2x8x128xf32, #tpu.memory_space<vmem>>, vector<1x8x128xf32>,
    %c1_i32 = arith.constant 1 : i32
    %17 = arith.index_cast %c1_i32 : i32 to index
    %c0_10 = arith.constant 0 : index
    %c0_11 = arith.constant 0 : index
    %18 = vector.load %arg2[%17, %c0_10, %c0_11] : memref<2x4x128xf32, #tpu.memory_space<vmem>>, vector<1x4x128xf32>
    %19 = vector.shape_cast %18 : vector<1x4x128xf32> to vector<4x128xf32>
    %cst_12 = arith.constant dense<0.000000e+00> : vector<8x128xf32>
    %20 = tpu.matmul %0, %19, %cst_12 {dimension_numbers = #tpu.dot_dimension_numbers<[1], [0], [0], [1], [0, 0, 1, 1], [], []>} : vector<8x4xf32>, vector<4x128xf32>, vector<8x128xf32> -> vector<8x128xf32>
    %cst_13 = arith.constant 0.000000e+00 : f32
    %21 = vector.broadcast %cst_13 : f32 to vector<8x128xf32>
    %22 = arith.maximumf %20, %21 : vector<8x128xf32>
    %23 = vector.broadcast %1 : vector<8x1xf32> to vector<8x128xf32>
    %24 = arith.mulf %22, %23 : vector<8x128xf32>
    %25 = vector.broadcast %2 : vector<8x1xf32> to vector<8x128xf32>
    %26 = arith.addf %24, %25 : vector<8x128xf32>
    %27 = arith.index_cast %c1_i32 : i32 to index
    %c0_14 = arith.constant 0 : index
    %c0_15 = arith.constant 0 : index
    %28 = vector.load %arg6[%27, %c0_14, %c0_15] : memref<2x8x128xf32, #tpu.memory_space<vmem>>, vector<1x8x128xf32>
    %29 = vector.shape_cast %28 : vector<1x8x128xf32> to vector<8x128xf32>
    %30 = vector.shape_cast %26 : vector<8x128xf32> to vector<1x8x128xf32>
    tpu.vector_store %arg6[%27, %c0_14, %c0_15], %30 {strides = array<i32>} : memref<2x8x128xf32, #tpu.memory_space<vmem>>, vector<1x8x128xf32>,
    %c2_i32 = arith.constant 2 : i32
    return
  }
  func.func @transform_0(%arg0: i32, %arg1: i32) -> (i32, i32, i32) {
    %c0_i32 = arith.constant 0 : i32
    %c0_i32_0 = arith.constant 0 : i32
    return %arg0, %c0_i32, %arg1 : i32, i32, i32
  }
  func.func @transform_1(%arg0: i32, %arg1: i32) -> (i32, i32) {
    %c0_i32 = arith.constant 0 : i32
    %c0_i32_0 = arith.constant 0 : i32
    %c0_i32_1 = arith.constant 0 : i32
    return %c0_i32, %c0_i32_0 : i32, i32
  }
  func.func @transform_2(%arg0: i32, %arg1: i32) -> (i32, i32) {
    %c0_i32 = arith.constant 0 : i32
    %c0_i32_0 = arith.constant 0 : i32
    %c0_i32_1 = arith.constant 0 : i32
    return %c0_i32, %c0_i32_0 : i32, i32
  }
  func.func @transform_3(%arg0: i32, %arg1: i32) -> (i32, i32) {
    %c0_i32 = arith.constant 0 : i32
    %c0_i32_0 = arith.constant 0 : i32
    %c0_i32_1 = arith.constant 0 : i32
    return %c0_i32, %c0_i32_0 : i32, i32
  }
  func.func @transform_4(%arg0: i32, %arg1: i32) -> (i32, i32, i32) {
    %c0_i32 = arith.constant 0 : i32
    %c0_i32_0 = arith.constant 0 : i32
    return %arg0, %c0_i32, %arg1 : i32, i32, i32
  }
}

</mosaic_0001>

<bundles_post_ra>
// kernel: conv1d_relu_bn.2
= control target key start
LH: loop header
LB: loop body
LE: loop exit
PB: predicated region body
PF: predicated region fallthrough
CT: control target
= control target key end

     0   :  { %vm19_vm0 = vcmask 1043456   ;;  %v216_v0 = vmov 0.0   ;;  %vm15_vm1 = vcmask 31744   ;;  %vm217_vm2 = vmmov 0   ;;  %s253_s0 = inlined_call_operand.vmem [shape: f32[2,4,128], index: 0, kind: input, shape index: {}]   ;;  %s254_s1 = inlined_call_operand.vmem [shape: f32[8,4], index: 1, kind: input, shape index: {}]   ;;  %s255_s2 = inlined_call_operand.vmem [shape: f32[1,1,8,1], index: 2, kind: output, shape index: {0}]   ;;  %s256_s3 = inlined_call_operand.vmem [shape: f32[1,1,8,1], index: 3, kind: output, shape index: {1}]  }
   0x1   :  { %204 = vmatprep.subr.mxu0 %v216_v0  ;;  %209 = vmatprep.subr.mxu1 %v216_v0  ;;  %v14_v1 = vld [vmem:[%s253_s0] sm:$0xf]  ;;  %v197_v2 = vld [vmem:[%s253_s0 + $0x4] sm:$0xf]  ;;  %vm184_vm3 = vcmask 7168  }
   0x2   :  { %v13_v3 = vld [vmem:[%s254_s1] sm:$0xff]  ;;  %205 = vmatpush3.msk.msra.mxu0 %vm19_vm0, %v14_v1  ;;  %206 = vmatprep.mubr.msk.f32.mxu0 %vm217_vm2, %v216_v0 }
   0x3   :  { %210 = vmatpush3.msk.msra.mxu1 %vm19_vm0, %v197_v2  ;;  %211 = vmatprep.mubr.msk.f32.mxu1 %vm217_vm2, %v216_v0 }
   0x4   :  { %207 = vmatmul.mubr.msk.f32.vlgmr.msra.gmra.mxu0 %vm15_vm1, %v13_v3  ;;  %212 = vmatmul.mubr.msk.f32.vlgmr.msra.gmra.mxu1 %vm15_vm1, %v13_v3 }
  0xc4   :  { %v89_v4 = vpop.f32.mrf.mxu0  ;;  %v172_v5 = vpop.f32.mrf.mxu1 }
  0xc5   :  { %v93_v6 = vmax.f32 %v89_v4, 0.0  ;;  %v176_v7 = vmax.f32 %v172_v5, 0.0 }
  0xc6   :  { %v208_v8 = vpop.f32.mrf.mxu0  ;;  %v213_v9 = vpop.f32.mrf.mxu1 }
  0xc7   :  { %177 = vadd.xlane.f32.xlu1 %v176_v7  ;;  %94 = vadd.xlane.f32.xlu0 %v93_v6  ;;  %v180_v10 = vmul.f32 %v176_v7, %v176_v7  ;;  %v97_v11 = vmul.f32 %v93_v6, %v93_v6 }
  0xcb   :  { %181 = vadd.xlane.f32.xlu1 %v180_v10  ;;  %98 = vadd.xlane.f32.xlu0 %v97_v11 }
 0x150   :  { %v178_v12 = vpop.xlane.xlu1 %177  ;;  %v95_v13 = vpop.xlane.xlu0 %94 }
 0x151   :  { %v179_v14 = vadd.f32 %v178_v12, %v95_v13 }
 0x153   :  { %185 = vst.msk [vmem:[%s255_s2] sm:$0xff] %vm184_vm3, %v179_v14 }
 0x154   :  { %v182_v15 = vpop.xlane.xlu1 %181  ;;  %v99_v16 = vpop.xlane.xlu0 %98 }
 0x155   :  { %v183_v17 = vadd.f32 %v182_v15, %v99_v16 }
 0x157   :  { %186 = vst.msk [vmem:[%s256_s3] sm:$0xff] %vm184_vm3, %v183_v17 }

// kernel: conv1d_relu_bn.3
= control target key start
LH: loop header
LB: loop body
LE: loop exit
PB: predicated region body
PF: predicated region fallthrough
CT: control target
= control target key end

     0   :  { %vm26_vm0 = vcmask 1043456   ;;  %v258_v1 = vmov 0.0   ;;  %vm22_vm1 = vcmask 31744   ;;  %vm259_vm2 = vmmov 0   ;;  %s307_s0 = inlined_call_operand.vmem [shape: f32[2,4,128], index: 0, kind: input, shape index: {}]   ;;  %s308_s1 = inlined_call_operand.vmem [shape: f32[8,4], index: 1, kind: input, shape index: {}]   ;;  %s309_s2 = inlined_call_operand.vmem [shape: f32[8,1], index: 2, kind: input, shape index: {}]   ;;  %s310_s3 = inlined_call_operand.vmem [shape: f32[8,1], index: 3, kind: input, shape index: {}]   ;;  %s311_s4 = inlined_call_operand.hbm [shape: f32[2,8,128], index: 4, kind: output, shape index: {}]  }
   0x1   :  { %v21_v0 = vld [vmem:[%s307_s0] sm:$0xf]  ;;  %219 = vmatprep.subr.mxu0 %v258_v1  ;;  %224 = vmatprep.subr.mxu1 %v258_v1  ;;  %v212_v2 = vld [vmem:[%s307_s0 + $0x4] sm:$0xf] }
   0x2   :  { %v18_v3 = vld [vmem:[%s308_s1] sm:$0xff]  ;;  %220 = vmatpush3.msk.msra.mxu0 %vm26_vm0, %v21_v0  ;;  %221 = vmatprep.mubr.msk.f32.mxu0 %vm259_vm2, %v258_v1 }
   0x3   :  { %9 = vsyncpa [#allocation3], 0  ;;  %225 = vmatpush3.msk.msra.mxu1 %vm26_vm0, %v212_v2  ;;  %226 = vmatprep.mubr.msk.f32.mxu1 %vm259_vm2, %v258_v1  ;;  %v19_v4 = vld [vmem:[%s309_s2] sm:$0xff]  ;;  %v260_v5 = vmov 0   ;;  %s261_s1 = smov [#allocation2]  }
   0x4   :  { %222 = vmatmul.mubr.msk.f32.vlgmr.msra.gmra.mxu0 %vm22_vm1, %v18_v3  ;;  %227 = vmatmul.mubr.msk.f32.vlgmr.msra.gmra.mxu1 %vm22_vm1, %v18_v3  ;;  %v20_v6 = vld [vmem:[%s310_s3] sm:$0xff]  ;;  %s199_s24 = sshll.u32 %s261_s1, 4  ;;  %s200_s24 = int_to_ptr.vmem [resolvable:$true] %s199_s24 }
   0x5   :  { %235 = vset.pattern.permute.xlu0 %v260_v5  ;;  %s236_s2 = scalar_lea.vmem %s200_s24, 256  ;;  %p241_p1 = scmp.lt.s32.totalorder %s200_s24, %s200_s24 }
   0x6   :  { %103 = vperm.xlu0 %235, %v19_v4   ;;  %p237_p0 = scmp.ne.s32.totalorder %s200_s24, %s236_s2  ;;  %p242_p2 = scmp.lt.s32.totalorder %s236_s2, %s236_s2 }
   0x8   :  { %p243_p3 = por %p242_p2, %p241_p1 }
   0xa   :  { %109 = vperm.xlu0 %235, %v20_v6   ;;  %p244_p4 = pnand %p243_p3, %p237_p0 }
  0x81   :  { %v104_v7 = vpop.permute.xlu0 %103 }
  0x85   :  { %v110_v16 = vpop.permute.xlu0 %109 }
  0xc4   :  { %v96_v8 = vpop.f32.mrf.mxu0  ;;  %v185_v9 = vpop.f32.mrf.mxu1 }
  0xc5   :  { %v100_v10 = vmax.f32 %v96_v8, 0.0  ;;  %v189_v11 = vmax.f32 %v185_v9, 0.0 }
  0xc6   :  { %v223_v12 = vpop.f32.mrf.mxu0  ;;  %v228_v13 = vpop.f32.mrf.mxu1 }
  0xc7   :  { %v106_v14 = vmul.f32 %v104_v7, %v100_v10  ;;  %v190_v15 = vmul.f32 %v189_v11, %v104_v7 }
  0xc9   :  { %v112_v17 = vadd.f32 %v110_v16, %v106_v14  ;;  %v191_v18 = vadd.f32 %v190_v15, %v110_v16 }
  0xcb   :  { %113 = vst [vmem:[#allocation2] sm:$0xff] %v112_v17  ;;  %193 = vst [vmem:[#allocation2 + $0x8] sm:$0xff] %v191_v18 }
  0xcc   :  { %247 = shalt.err (!%p244_p4)
}
  0xcd   :  { %s262_s3 = smov 128   ;;  %s263_s25 = smov 8  }
  0xce   :  { %205 = dma.vmem_to_hbm [thread:$0]  %s200_s24, 256, %s311_s4, [#allocation3], %s262_s3, %s262_s3, %s263_s25  }
  0xcf   :  { %256 = dma.done.wait [#allocation3], 256  }
  0xd0   :  { %257 = vsyncadd [#allocation3], 4294967040 }
  0xd1   :  { %209 = vsyncpa [#allocation3], 1 }

</bundles_post_ra>
